<compile_context>
chip_gen: v7x
topology: tpu7x:2x2x1
jax: 0.10.0
libtpu: 0.0.40
codegen_flags: <defaults>
</compile_context>

<pallas_src>
import math
import numpy as np
import jax
import jax.numpy as jnp
from jax.experimental import pallas as pl
from jax.experimental.pallas import tpu as pltpu


_ROW_CHUNK = 64  # sublane chunk (multiple of 8) for the running max of big windows


def _level_geometry(h, w, level):
    """Static pooling geometry exactly as in the torch module."""
    kh = math.ceil(h / level)
    kw = math.ceil(w / level)
    ph = math.ceil((kh * level - h + 1) / 2)
    pw = math.ceil((kw * level - w + 1) / 2)
    # torch itself raises when padding > kernel/2; we only claim to match torch in
    # the regime where torch does not raise.
    assert 2 * ph <= kh and 2 * pw <= kw, "padding larger than half the kernel"
    oh = (h + 2 * ph - kh) // kh + 1
    ow = (w + 2 * pw - kw) // kw + 1
    # Clamp every (padded) window to the valid region.  Exact for max-pool (pad is
    # -inf) and for avg-pool with count_include_pad=True (pads add 0 to the sum
    # while the divisor stays kh*kw).
    row_windows = [(max(oi * kh - ph, 0), min(oi * kh - ph + kh, h)) for oi in range(oh)]
    col_windows = [(max(oj * kw - pw, 0), min(oj * kw - pw + kw, w)) for oj in range(ow)]
    assert all(re > rs for rs, re in row_windows), "empty pooling window"
    assert all(ce > cs for cs, ce in col_windows), "empty pooling window"
    return kh, kw, oh, ow, row_windows, col_windows


def _build_kernel(h, w, num_levels, pool_type):
    """Per-channel kernel (grid is over channels) + the shared bf16 pooling matrix."""
    geoms = [_level_geometry(h, w, lvl + 1) for lvl in range(num_levels)]

    if pool_type == 'max_pool':
        def kernel(x_ref, *o_refs):
            # x_ref: (1, h, w) block = one channel, native dtype.
            for (_kh, _kw, oh, ow, rws, cws), o_ref in zip(geoms, o_refs):
                # Row stage: chunked running max in the NATIVE dtype.  The chunking
                # bounds live vregs even when a window spans the whole image
                # (level 1: kh == h).  Note: non-8-aligned window starts may cost a
                # small VMEM copy; windows here are tiny in count (<= level per dim).
                rows = []
                for (rs, re) in rws:
                    acc = None
                    s = rs
                    while s < re:
                        e = min(s + _ROW_CHUNK, re)
                        m = jnp.max(x_ref[0, s:e, :], axis=0, keepdims=True)  # (1, w)
                        acc = m if acc is None else jnp.maximum(acc, m)
                        s = e
                    rows.append(acc)
                rp = rows[0] if oh == 1 else jnp.concatenate(rows, axis=0)     # (oh, w)
                # Column stage: lane-window max on the tiny (oh, w) tile.
                cols = [jnp.max(rp[:, cs:ce], axis=1, keepdims=True) for (cs, ce) in cws]
                p = cols[0] if ow == 1 else jnp.concatenate(cols, axis=1)      # (oh, ow)
                # Cast ONLY the pooled tile to the f32 output dtype.
                o_ref[0, :, :] = p.astype(jnp.float32)
        return kernel, geoms, None

    # avg_pool: one stacked 0/1 row-pooling matrix for ALL levels, shared across
    # channels, in bf16 (0/1 is exact in bf16; halves its DMA/VMEM footprint).
    row_offs, off = [], 0
    for (_kh, _kw, oh, _ow, _rws, _cws) in geoms:
        row_offs.append(off)
        off += oh
    total_oh = off
    pr_np = np.zeros((total_oh, h), dtype=np.float32)
    for (_kh, _kw, oh, _ow, rws, _cws), roff in zip(geoms, row_offs):
        for oi, (rs, re) in enumerate(rws):
            pr_np[roff + oi, rs:re] = 1.0
    pr_mat = jnp.asarray(pr_np, dtype=jnp.bfloat16)

    def kernel(x_ref, pr_ref, *o_refs):
        # bf16 MXU operand: no-op cast if the image is already bf16; exact for
        # integer-valued (uint8-origin) image data.  (For arbitrary non-integer f32
        # inputs this path is ~1e-3 accurate; torch-exactness is only claimed for
        # integer-valued images, which is the module's cv2.imread use case.)
        xb = x_ref[0].astype(jnp.bfloat16)                                     # (h, w)
        # Row stage for ALL levels in one small bf16 MXU matmul, f32 accumulation
        # (exact for integer image data).
        rp_all = jnp.dot(pr_ref[...], xb, preferred_element_type=jnp.float32)  # (total_oh, w)
        for (kh, kw, oh, ow, _rws, cws), roff, o_ref in zip(geoms, row_offs, o_refs):
            rp = rp_all[roff:roff + oh, :]                                     # (oh, w)
            # Column stage: exact f32 lane-window sums on the tiny (oh, w) tile.
            sums = [jnp.sum(rp[:, cs:ce], axis=1, keepdims=True) for (cs, ce) in cws]
            p = sums[0] if ow == 1 else jnp.concatenate(sums, axis=1)          # (oh, ow)
            # count_include_pad=True divisor (torch default).
            o_ref[0, :, :] = p * (1.0 / float(kh * kw))

    return kernel, geoms, pr_mat


def _vmem_limit_bytes(in_block_bytes, mat_bytes, out_block_bytes):
    """Generation-aware scoped-VMEM limit from the per-grid-step resident footprint."""
    try:
        cap = int(pltpu.get_tpu_info().vmem_capacity_bytes)
    except Exception:
        cap = 64 << 20  # be conservative: v7x per-TensorCore VMEM
    footprint = 2 * in_block_bytes + 2 * mat_bytes + 2 * out_block_bytes  # double buffers
    want = max(32 << 20, 4 * footprint)          # headroom for internal scratch
    return max(16 << 20, min(int(0.6 * cap), want))


def spp_forward(x_hwc, num_levels, pool_type='max_pool'):
    """Pallas implementation of SPPLayer.forward for an HWC image tensor."""
    h, w, c = x_hwc.shape
    # torch: x.view(c, h, w) on the HWC buffer == raw row-major reinterpretation.
    x_chw = jnp.reshape(x_hwc, (c, h, w))

    kernel, geoms, pr_mat = _build_kernel(h, w, num_levels, pool_type)

    in_specs = [pl.BlockSpec((1, h, w), lambda ch: (ch, 0, 0))]
    extra_args = []
    if pr_mat is not None:
        in_specs.append(pl.BlockSpec(pr_mat.shape, lambda ch: (0, 0)))
        extra_args.append(pr_mat)

    out_shape = tuple(jax.ShapeDtypeStruct((c, oh, ow), jnp.float32)
                      for (_kh, _kw, oh, ow, _r, _c2) in geoms)
    out_specs = tuple(pl.BlockSpec((1, oh, ow), lambda ch: (ch, 0, 0))
                      for (_kh, _kw, oh, ow, _r, _c2) in geoms)

    in_block_bytes = h * w * x_chw.dtype.itemsize
    mat_bytes = 0 if pr_mat is None else int(pr_mat.size) * pr_mat.dtype.itemsize
    out_block_bytes = sum(oh * ow * 4 for (_kh, _kw, oh, ow, _r, _c2) in geoms)
    vmem_limit = _vmem_limit_bytes(in_block_bytes, mat_bytes, out_block_bytes)

    outs = pl.pallas_call(
        kernel,
        grid=(c,),
        in_specs=in_specs,
        out_specs=out_specs,
        out_shape=out_shape,
        compiler_params=pltpu.CompilerParams(
            dimension_semantics=("parallel",),
            vmem_limit_bytes=vmem_limit),
    )(x_chw, *extra_args)

    if not isinstance(outs, (tuple, list)):
        outs = (outs,)
    # torch: tensor.view(1, -1) per level + concat along dim 1 — done wrapper-side
    # as near-free metadata/copy ops on the tiny pooled outputs.
    flats = [jnp.reshape(o, (1, -1)) for o in outs]
    return jnp.concatenate(flats, axis=1)


def spp_reference(x_hwc, num_levels, pool_type='max_pool'):
    """Pure-jnp reference with identical (torch) semantics, for the self-check."""
    h, w, c = x_hwc.shape
    x = jnp.reshape(x_hwc, (c, h, w)).astype(jnp.float32)
    flats = []
    for i in range(num_levels):
        kh, kw, oh, ow, rws, cws = _level_geometry(h, w, i + 1)
        red = jnp.max if pool_type == 'max_pool' else jnp.sum
        rp = jnp.concatenate([red(x[:, rs:re, :], axis=1, keepdims=True)
                              for rs, re in rws], axis=1)
        p = jnp.concatenate([red(rp[:, :, cs:ce], axis=2, keepdims=True)
                             for cs, ce in cws], axis=2)
        if pool_type != 'max_pool':
            p = p * (1.0 / float(kh * kw))
        flats.append(jnp.reshape(p, (1, -1)))
    return jnp.concatenate(flats, axis=1)


if __name__ == "__main__":
    key = jax.random.PRNGKey(0)
    h, w, c = 16, 16, 4
    # Synthetic integer-valued HWC "image" (stand-in for cv2.imread's uint8 data),
    # stored in bf16 (0..255 is exact in bf16) so the kernel's native-dtype max
    # path and bf16 MXU avg path are both exact.
    x = jax.random.randint(key, (h, w, c), 0, 256).astype(jnp.bfloat16)

    num_levels = 3
    expected_cols = sum(c * oh * ow for (_kh, _kw, oh, ow, _r, _c2) in
                        (_level_geometry(h, w, lvl + 1) for lvl in range(num_levels)))

    for pool_type in ("max_pool", "avg_pool"):
        out = jax.block_until_ready(spp_forward(x, num_levels, pool_type=pool_type))
        assert out.shape == (1, expected_cols), (pool_type, out.shape)
        ref = spp_reference(x, num_levels, pool_type=pool_type)
        assert jnp.allclose(out, ref, rtol=1e-5, atol=1e-4), (pool_type, out, ref)

    print("KERNEL_OK")
</pallas_src>

<mosaic_0001>
module attributes {stable_mosaic.version = 11 : i64} {
  func.func @kernel(%arg0: i32, %arg1: memref<1x16x16xbf16, #tpu.memory_space<vmem>>, %arg2: memref<1x1x1xf32, #tpu.memory_space<vmem>>, %arg3: memref<1x2x2xf32, #tpu.memory_space<vmem>>, %arg4: memref<1x3x3xf32, #tpu.memory_space<vmem>>) attributes {dimension_semantics = [#tpu.dimension_semantics<parallel>], iteration_bounds = array<i64: 4>, scalar_prefetch = 0 : i64, scratch_operands = 0 : i64, tpu.core_type = #tpu.core_type<tc>, window_params = [{transform_indices = @transform_0, window_bounds = array<i64: 1, 16, 16>}, {transform_indices = @transform_1, window_bounds = array<i64: 1, 1, 1>}, {transform_indices = @transform_2, window_bounds = array<i64: 1, 2, 2>}, {transform_indices = @transform_3, window_bounds = array<i64: 1, 3, 3>}]} {
    %c0 = arith.constant 0 : index
    %c0_0 = arith.constant 0 : index
    %c0_1 = arith.constant 0 : index
    %0 = vector.load %arg1[%c0, %c0_0, %c0_1] : memref<1x16x16xbf16, #tpu.memory_space<vmem>>, vector<1x15x16xbf16>
    %1 = vector.shape_cast %0 : vector<1x15x16xbf16> to vector<15x16xbf16>
    %cst = arith.constant dense<0xFF80> : vector<16xbf16>
    %2 = vector.multi_reduction <maximumf>, %1, %cst [0] : vector<15x16xbf16> to vector<16xbf16>
    %3 = vector.shape_cast %2 : vector<16xbf16> to vector<1x16xbf16>
    %4 = vector.extract_strided_slice %3 {offsets = [0, 0], sizes = [1, 15], strides = [1, 1]} : vector<1x16xbf16> to vector<1x15xbf16>
    %cst_2 = arith.constant dense<0xFF80> : vector<1xbf16>
    %5 = vector.multi_reduction <maximumf>, %4, %cst_2 [1] : vector<1x15xbf16> to vector<1xbf16>
    %6 = vector.shape_cast %5 : vector<1xbf16> to vector<1x1xbf16>
    %7 = arith.extf %6 : vector<1x1xbf16> to vector<1x1xf32>
    %c0_3 = arith.constant 0 : index
    %c0_4 = arith.constant 0 : index
    %c0_5 = arith.constant 0 : index
    %8 = vector.load %arg2[%c0_3, %c0_4, %c0_5] : memref<1x1x1xf32, #tpu.memory_space<vmem>>, vector<1x1x1xf32>
    %9 = vector.shape_cast %8 : vector<1x1x1xf32> to vector<1x1xf32>
    %10 = vector.shape_cast %7 : vector<1x1xf32> to vector<1x1x1xf32>
    tpu.vector_store %arg2[%c0_3, %c0_4, %c0_5], %10 {strides = array<i32>} : memref<1x1x1xf32, #tpu.memory_space<vmem>>, vector<1x1x1xf32>,
    %c0_6 = arith.constant 0 : index
    %c0_7 = arith.constant 0 : index
    %c0_8 = arith.constant 0 : index
    %11 = vector.load %arg1[%c0_6, %c0_7, %c0_8] : memref<1x16x16xbf16, #tpu.memory_space<vmem>>, vector<1x7x16xbf16>
    %12 = vector.shape_cast %11 : vector<1x7x16xbf16> to vector<7x16xbf16>
    %cst_9 = arith.constant dense<0xFF80> : vector<16xbf16>
    %13 = vector.multi_reduction <maximumf>, %12, %cst_9 [0] : vector<7x16xbf16> to vector<16xbf16>
    %14 = vector.shape_cast %13 : vector<16xbf16> to vector<1x16xbf16>
    %c0_10 = arith.constant 0 : index
    %c7 = arith.constant 7 : index
    %c0_11 = arith.constant 0 : index
    %15 = vector.load %arg1[%c0_10, %c7, %c0_11] : memref<1x16x16xbf16, #tpu.memory_space<vmem>>, vector<1x8x16xbf16>
    %16 = vector.shape_cast %15 : vector<1x8x16xbf16> to vector<8x16xbf16>
    %cst_12 = arith.constant dense<0xFF80> : vector<16xbf16>
    %17 = vector.multi_reduction <maximumf>, %16, %cst_12 [0] : vector<8x16xbf16> to vector<16xbf16>
    %18 = vector.shape_cast %17 : vector<16xbf16> to vector<1x16xbf16>
    %19 = tpu.concatenate %14, %18 in 0 : vector<1x16xbf16>, vector<1x16xbf16> -> vector<2x16xbf16>
    %20 = vector.extract_strided_slice %19 {offsets = [0, 0], sizes = [2, 7], strides = [1, 1]} : vector<2x16xbf16> to vector<2x7xbf16>
    %cst_13 = arith.constant dense<0xFF80> : vector<2xbf16>
    %21 = vector.multi_reduction <maximumf>, %20, %cst_13 [1] : vector<2x7xbf16> to vector<2xbf16>
    %22 = vector.shape_cast %21 : vector<2xbf16> to vector<2x1xbf16>
    %23 = vector.extract_strided_slice %19 {offsets = [0, 7], sizes = [2, 8], strides = [1, 1]} : vector<2x16xbf16> to vector<2x8xbf16>
    %cst_14 = arith.constant dense<0xFF80> : vector<2xbf16>
    %24 = vector.multi_reduction <maximumf>, %23, %cst_14 [1] : vector<2x8xbf16> to vector<2xbf16>
    %25 = vector.shape_cast %24 : vector<2xbf16> to vector<2x1xbf16>
    %26 = tpu.concatenate %22, %25 in 1 : vector<2x1xbf16>, vector<2x1xbf16> -> vector<2x2xbf16>
    %27 = arith.extf %26 : vector<2x2xbf16> to vector<2x2xf32>
    %c0_15 = arith.constant 0 : index
    %c0_16 = arith.constant 0 : index
    %c0_17 = arith.constant 0 : index
    %28 = vector.load %arg3[%c0_15, %c0_16, %c0_17] : memref<1x2x2xf32, #tpu.memory_space<vmem>>, vector<1x2x2xf32>
    %29 = vector.shape_cast %28 : vector<1x2x2xf32> to vector<2x2xf32>
    %30 = vector.shape_cast %27 : vector<2x2xf32> to vector<1x2x2xf32>
    tpu.vector_store %arg3[%c0_15, %c0_16, %c0_17], %30 {strides = array<i32>} : memref<1x2x2xf32, #tpu.memory_space<vmem>>, vector<1x2x2xf32>,
    %c0_18 = arith.constant 0 : index
    %c0_19 = arith.constant 0 : index
    %c0_20 = arith.constant 0 : index
    %31 = vector.load %arg1[%c0_18, %c0_19, %c0_20] : memref<1x16x16xbf16, #tpu.memory_space<vmem>>, vector<1x4x16xbf16>
    %32 = vector.shape_cast %31 : vector<1x4x16xbf16> to vector<4x16xbf16>
    %cst_21 = arith.constant dense<0xFF80> : vector<16xbf16>
    %33 = vector.multi_reduction <maximumf>, %32, %cst_21 [0] : vector<4x16xbf16> to vector<16xbf16>
    %34 = vector.shape_cast %33 : vector<16xbf16> to vector<1x16xbf16>
    %c0_22 = arith.constant 0 : index
    %c4 = arith.constant 4 : index
    %c0_23 = arith.constant 0 : index
    %35 = vector.load %arg1[%c0_22, %c4, %c0_23] : memref<1x16x16xbf16, #tpu.memory_space<vmem>>, vector<1x6x16xbf16>
    %36 = vector.shape_cast %35 : vector<1x6x16xbf16> to vector<6x16xbf16>
    %cst_24 = arith.constant dense<0xFF80> : vector<16xbf16>
    %37 = vector.multi_reduction <maximumf>, %36, %cst_24 [0] : vector<6x16xbf16> to vector<16xbf16>
    %38 = vector.shape_cast %37 : vector<16xbf16> to vector<1x16xbf16>
    %c0_25 = arith.constant 0 : index
    %c10 = arith.constant 10 : index
    %c0_26 = arith.constant 0 : index
    %39 = vector.load %arg1[%c0_25, %c10, %c0_26] : memref<1x16x16xbf16, #tpu.memory_space<vmem>>, vector<1x6x16xbf16>
    %40 = vector.shape_cast %39 : vector<1x6x16xbf16> to vector<6x16xbf16>
    %cst_27 = arith.constant dense<0xFF80> : vector<16xbf16>
    %41 = vector.multi_reduction <maximumf>, %40, %cst_27 [0] : vector<6x16xbf16> to vector<16xbf16>
    %42 = vector.shape_cast %41 : vector<16xbf16> to vector<1x16xbf16>
    %43 = tpu.concatenate %34, %38, %42 in 0 : vector<1x16xbf16>, vector<1x16xbf16>, vector<1x16xbf16> -> vector<3x16xbf16>
    %44 = vector.extract_strided_slice %43 {offsets = [0, 0], sizes = [3, 4], strides = [1, 1]} : vector<3x16xbf16> to vector<3x4xbf16>
    %cst_28 = arith.constant dense<0xFF80> : vector<3xbf16>
    %45 = vector.multi_reduction <maximumf>, %44, %cst_28 [1] : vector<3x4xbf16> to vector<3xbf16>
    %46 = vector.shape_cast %45 : vector<3xbf16> to vector<3x1xbf16>
    %47 = vector.extract_strided_slice %43 {offsets = [0, 4], sizes = [3, 6], strides = [1, 1]} : vector<3x16xbf16> to vector<3x6xbf16>
    %cst_29 = arith.constant dense<0xFF80> : vector<3xbf16>
    %48 = vector.multi_reduction <maximumf>, %47, %cst_29 [1] : vector<3x6xbf16> to vector<3xbf16>
    %49 = vector.shape_cast %48 : vector<3xbf16> to vector<3x1xbf16>
    %50 = vector.extract_strided_slice %43 {offsets = [0, 10], sizes = [3, 6], strides = [1, 1]} : vector<3x16xbf16> to vector<3x6xbf16>
    %cst_30 = arith.constant dense<0xFF80> : vector<3xbf16>
    %51 = vector.multi_reduction <maximumf>, %50, %cst_30 [1] : vector<3x6xbf16> to vector<3xbf16>
    %52 = vector.shape_cast %51 : vector<3xbf16> to vector<3x1xbf16>
    %53 = tpu.concatenate %46, %49, %52 in 1 : vector<3x1xbf16>, vector<3x1xbf16>, vector<3x1xbf16> -> vector<3x3xbf16>
    %54 = arith.extf %53 : vector<3x3xbf16> to vector<3x3xf32>
    %c0_31 = arith.constant 0 : index
    %c0_32 = arith.constant 0 : index
    %c0_33 = arith.constant 0 : index
    %55 = vector.load %arg4[%c0_31, %c0_32, %c0_33] : memref<1x3x3xf32, #tpu.memory_space<vmem>>, vector<1x3x3xf32>
    %56 = vector.shape_cast %55 : vector<1x3x3xf32> to vector<3x3xf32>
    %57 = vector.shape_cast %54 : vector<3x3xf32> to vector<1x3x3xf32>
    tpu.vector_store %arg4[%c0_31, %c0_32, %c0_33], %57 {strides = array<i32>} : memref<1x3x3xf32, #tpu.memory_space<vmem>>, vector<1x3x3xf32>,
    return
  }
  func.func @transform_0(%arg0: i32) -> (i32, i32, i32) {
    %c0_i32 = arith.constant 0 : i32
    %c0_i32_0 = arith.constant 0 : i32
    %c0_i32_1 = arith.constant 0 : i32
    return %arg0, %c0_i32, %c0_i32_0 : i32, i32, i32
  }
  func.func @transform_1(%arg0: i32) -> (i32, i32, i32) {
    %c0_i32 = arith.constant 0 : i32
    %c0_i32_0 = arith.constant 0 : i32
    %c0_i32_1 = arith.constant 0 : i32
    return %arg0, %c0_i32, %c0_i32_0 : i32, i32, i32
  }
  func.func @transform_2(%arg0: i32) -> (i32, i32, i32) {
    %c0_i32 = arith.constant 0 : i32
    %c0_i32_0 = arith.constant 0 : i32
    %c0_i32_1 = arith.constant 0 : i32
    return %arg0, %c0_i32, %c0_i32_0 : i32, i32, i32
  }
  func.func @transform_3(%arg0: i32) -> (i32, i32, i32) {
    %c0_i32 = arith.constant 0 : i32
    %c0_i32_0 = arith.constant 0 : i32
    %c0_i32_1 = arith.constant 0 : i32
    return %arg0, %c0_i32, %c0_i32_0 : i32, i32, i32
  }
}

</mosaic_0001>

<bundles_post_ra>
// kernel: tpu_custom_call.1
= control target key start
LH: loop header
LB: loop body
LE: loop exit
PB: predicated region body
PF: predicated region fallthrough
CT: control target
= control target key end

     0   :  { %9 = vsyncpa [#allocation3], 0  ;;  %s785_s0 = inlined_call_operand.hbm [shape: bf16[4,16,16], index: 0, kind: input, shape index: {}]   ;;  %s786_s1 = inlined_call_operand.vmem [shape: f32[4,1,1], index: 1, kind: output, shape index: {0}]   ;;  %s787_s2 = inlined_call_operand.vmem [shape: f32[4,2,2], index: 2, kind: output, shape index: {1}]   ;;  %s788_s3 = inlined_call_operand.vmem [shape: f32[4,3,3], index: 3, kind: output, shape index: {2}]  }
   0x1   :  { %11 = vsyncpa [#allocation3 + $0x1], 0  ;;  %s654_s12 = smov 0   ;;  %s656_s13 = smov 0  }
   0x2   :  { %s658_s14 = smov 0   ;;  %s660_s15 = smov 0  }
   0x3 LB: > { %s673_s16 = sadd.s32 4294967295, %s629_s15   ;;  %s676_s17 = sadd.s32 1, %s629_s15   ;;  %s629_s15 = sphi %s660_s15, %s795_s15   ;;  %s625_s14 = sphi %s658_s14, %s794_s14   ;;  %s621_s13 = sphi %s656_s13, %s793_s13   ;;  %s617_s12 = sphi %s654_s12, %s792_s12  }
   0x4   : > { %s21_s18 = ssub.s32 %s629_s15, %s676_s17  ;;  %s24_s19 = sadd.s32 1, %s625_s14 }
   0x5   : > { %p22_p0 = scmp.eq.s32.totalorder %s21_s18, 0  ;;  %p31_p1 = scmp.ne.s32.totalorder %s625_s14, %s621_s13 }
   0x6   : > { %p32_p2 = scmp.eq.s32.totalorder %s629_s15, 0  ;;  %p37_p3 = scmp.ne.s32.totalorder %s621_s13, %s617_s12 }
   0x7   : > { %s686_s20 = scalar_select %p22_p0, %s625_s14, %s24_s19  }
   0x8   : > { %p33_p4 = por %p32_p2, %p31_p1  ;;  %p38_p5 = scmp.eq.s32.totalorder %s673_s16, 0 }
   0x9   : > { %p527_p6 = scmp.lt.s32.totalorder %s629_s15, 4  ;;  %s139_s22 = sand.u32 1, %s625_s14  }
   0xa   : > { %p690_p7 = por %p38_p5, %p37_p3  ;;  %s508_s23 = sshll.u32 %s139_s22, 3 }
   0xb   : > { %s520_s24 = sshll.u32 %s629_s15, 7  ;;  %s143_s28 = scalar_lea.vmem [#allocation2], %s508_s23 }
   0xc   : > { %s699_s27 = scalar_lea.hbm %s785_s0, %s520_s24  ;;  %s150_s29 = sshll.u32 %s143_s28, 4  ;;  %s701_s29 = int_to_ptr.vmem [resolvable:$true] %s150_s29 }
   0xd   : > { %p703_p8 = pnand %p527_p6, %p33_p4  ;;  %s708_s4 = scalar_lea.sflag [#allocation3], %s139_s22 }
   0xe   : > { %s565_s5 = scalar_lea.hbm %s699_s27, 128  ;;  %s570_s8 = scalar_lea.hbm %s785_s0, 512 }
   0xf   : > { %p566_p10 = scmp.ne.s32.totalorder %s699_s27, %s565_s5  ;;  %p567_p11 = pneg %p703_p8 }
  0x10   : > { %p571_p0 = scmp.lt.u32.totalorder %s699_s27, %s785_s0  ;;  %p572_p1 = scmp.lt.u32.totalorder %s570_s8, %s565_s5 }
  0x11   : > { %p568_p12 = pnand %p567_p11, %p566_p10  ;;  %p574_p3 = scmp.lt.u32.totalorder %s565_s5, %s699_s27 }
  0x12   : > { %p573_p2 = por %p572_p1, %p571_p0 }
  0x13   : > { %p569_p13 = pneg %p568_p12 }
  0x14   : > { %p575_p4 = por %p574_p3, %p573_p2 }
  0x16   : > { %p576_p5 = pnand %p575_p4, %p569_p13 }
  0x18   : > { %579 = shalt.err (!%p576_p5)
}
  0x19   : > { %s580_s11 = scalar_lea.vmem %s701_s29, 128  ;;  %s631_s12 = smov [#allocation2]  }
  0x1a   : > { %p581_p6 = scmp.ne.s32.totalorder %s701_s29, %s580_s11  ;;  %s585_s18 = sshll.u32 %s631_s12, 4  ;;  %s586_s18 = int_to_ptr.vmem [resolvable:$false] %s585_s18 }
  0x1b   : > { %s587_s19 = scalar_lea.vmem %s586_s18, 256  ;;  %p588_p9 = scmp.lt.s32.totalorder %s701_s29, %s586_s18 }
  0x1c   : > { %p583_p10 = pnand %p581_p6, %p567_p11  ;;  %p589_p0 = scmp.lt.s32.totalorder %s587_s19, %s580_s11 }
  0x1e   : > { %p584_p12 = pneg %p583_p10  ;;  %p590_p1 = por %p589_p0, %p588_p9 }
  0x20   : > { %p591_p2 = pnand %p590_p1, %p584_p12 }
  0x22   : > { %594 = shalt.err (!%p591_p2)
}
  0x23   : > { %s632_s22 = smov 64   ;;  %s633_s23 = smov 4  }
  0x24   : > { %526 = dma.hbm_to_vmem [thread:$0]  (!%p703_p8), %s699_s27, 128, %s701_s29, %s708_s4, %s632_s22, %s632_s22, %s633_s23  }
  0x25   : > { %p158_p11 = scmp.lt.s32.totalorder %s629_s15, 5  ;;  %p791_p13 = scmp.ge.s32.totalorder %s629_s15, 1 }
  0x27   : > { %p159_p3 = pnand %p791_p13, %p158_p11 }
  0x28   : > { %s164_s24 = sand.u32 (!%p159_p3), 1, %s621_s13  }
  0x29   : > { %162 = sbr.rel (%p159_p3) target bundleno = 244 (0xf4), region = 24  ;;  %s512_s25 = sshll.u32 (!%p159_p3), %s164_s24, 3 }
  0x2a   : > { %s165_s26 = scalar_lea.sflag (!%p159_p3), [#allocation3], %s164_s24  ;;  %s740_s28 = scalar_lea.vmem (!%p159_p3), [#allocation2], %s512_s25 }
  0x30   : > { %612 = dma.done.wait (%p690_p7), %s165_s26, 128  }
  0x31   : > { %614 = vsyncadd (%p690_p7), %s165_s26, 4294967168  ;;  %vm242_vm0 = vcmask 125952   ;;  %vm243_vm1 = vsmask.f32 3328  ;;  %vm264_vm2 = vcmask 130051   ;;  %vm302_vm5 = vcmask 123904  }
  0x32   : > { %vm265_vm3 = vsmask.f32 7438  ;;  %vm244_vm4 = vmand %vm242_vm0, %vm243_vm1  ;;  %vm323_vm7 = vcmask 126978   ;;  %vm338_vm8 = vcmask 125953   ;;  %vm217_vm9 = vcmask 130048   ;;  %v564_v20 = vld [vmem:[%s740_s28] sm:$0xff]  }
  0x33   : > { %vm266_vm6 = vmand %vm264_vm2, %vm265_vm3  ;;  %vm218_vm10 = vsmask.f32 7424  ;;  %v241_v0 = vld [vmem:[%s740_s28] sm:$0xf]  ;;  %v337_v11 = vld [vmem:[%s740_s28 + $0x4] sm:$0xe] }
  0x34   : > { %v245_v1 = vsel %vm244_vm4, %v241_v0, 4286644096  ;;  %v562_v2 = vld [vmem:[%s740_s28] sm:$0xf8]   ;;  %v301_v3 = vld [vmem:[%s740_s28] sm:$0x3]  ;;  %vm219_vm11 = vmand %vm217_vm9, %vm218_vm10 }
  0x35   : > { %v246_v4 = vunpack.i.l.bf16 %v245_v1  ;;  %v247_v5 = vunpack.i.h.bf16 %v245_v1  ;;  %v304_v6 = vsel %vm302_vm5, %v301_v3, 4286644096  ;;  %v267_v7 = vsel %vm266_vm6, %v562_v2, 4286644096  ;;  %v563_v10 = vld [vmem:[%s740_s28] sm:$0x1c]  }
  0x36   : > { %v306_v8 = vunpack.i.l.bf16 %v304_v6  ;;  %v307_v9 = vunpack.i.h.bf16 %v304_v6  ;;  %v268_v13 = vunpack.i.l.bf16 %v267_v7  ;;  %v269_v14 = vunpack.i.h.bf16 %v267_v7  ;;  %p197_p7 = scmp.lt.s32.totalorder %s673_s16, 3 }
  0x37   : > { %v248_v12 = vmax.f32 %v246_v4, %v247_v5  ;;  %v340_v15 = vsel %vm338_vm8, %v337_v11, 4286644096  ;;  %v325_v17 = vsel %vm323_vm7, %v563_v10, 4286644096  ;;  %v220_v27 = vsel %vm219_vm11, %v564_v20, 4286644096 }
  0x38   : > { %v308_v16 = vmax.f32 %v306_v8, %v307_v9  ;;  %v342_v18 = vunpack.i.l.bf16 %v340_v15  ;;  %v343_v19 = vunpack.i.h.bf16 %v340_v15  ;;  %v270_v22 = vmax.f32 %v268_v13, %v269_v14  ;;  %s797_s16 = smov (!%p197_p7, %s673_s16), 3 }
  0x39   : > { %v249_v21 = vrot.slane %v248_v12, 4  ;;  %v327_v23 = vunpack.i.l.bf16 %v325_v17  ;;  %v328_v24 = vunpack.i.h.bf16 %v325_v17  ;;  %v221_v31 = vunpack.i.l.bf16 %v220_v27  ;;  %s513_s15 = sshll.u32 %s797_s16, 1  ;;  %s199_s5 = scalar_lea.vmem %s786_s1, %s797_s16 }
  0x3a   : > { %v309_v25 = vrot.slane %v308_v16, 4  ;;  %v344_v26 = vmax.f32 %v342_v18, %v343_v19  ;;  %v271_v29 = vrot.slane %v270_v22, 4  ;;  %v222_v34 = vunpack.i.h.bf16 %v220_v27  ;;  %s203_s29 = scalar_lea.vmem %s787_s2, %s513_s15  ;;  %s514_s6 = sshll.u32 %s797_s16, 2 }
  0x3b   : > { %v250_v28 = vmax.f32 %v248_v12, %v249_v21  ;;  %v329_v30 = vmax.f32 %v327_v23, %v328_v24  ;;  %vm278_vm12 = vcmask 1040384   ;;  %vm279_vm13 = vsmask.f32 256  ;;  %s207_s9 = scalar_lea.vmem %s788_s3, %s514_s6 }
  0x3c   : > { %v310_v32 = vmax.f32 %v308_v16, %v309_v25  ;;  %v345_v33 = vrot.slane %v344_v26, 4  ;;  %v272_v36 = vmax.f32 %v270_v22, %v271_v29  ;;  %v223_v40 = vmax.f32 %v221_v31, %v222_v34  ;;  %vm280_vm14 = vmand %vm278_vm12, %vm279_vm13 }
  0x3d   : > { %v251_v35 = vrot.slane %v250_v28, 2  ;;  %v330_v37 = vrot.slane %v329_v30, 4  ;;  %vm282_vm15 = vcmask 49152   ;;  %vm358_vm0 = vcmask 25600  }
  0x3e   : > { %v311_v38 = vrot.slane %v310_v32, 2  ;;  %v346_v39 = vmax.f32 %v344_v26, %v345_v33  ;;  %v273_v42 = vrot.slane %v272_v36, 2  ;;  %v224_v46 = vrot.slane %v223_v40, 4 }
  0x3f   : > { %v252_v41 = vmax.f32 %v250_v28, %v251_v35  ;;  %v331_v43 = vmax.f32 %v329_v30, %v330_v37  ;;  %vm359_vm1 = vsmask.f32 1280  ;;  %vm288_vm3 = vcmask 114744  }
  0x40   : > { %v312_v44 = vmax.f32 %v310_v32, %v311_v38  ;;  %v347_v45 = vrot.slane %v346_v39, 2  ;;  %v274_v48 = vmax.f32 %v272_v36, %v273_v42  ;;  %v225_v52 = vmax.f32 %v223_v40, %v224_v46  ;;  %vm360_vm2 = vmand %vm358_vm0, %vm359_vm1 }
  0x41   : > { %v253_v47 = vrot.slane %v252_v41, 1  ;;  %v332_v49 = vrot.slane %v331_v43, 2  ;;  %vm364_vm4 = vcmask 74784   ;;  %vm369_vm6 = vcmask 123984  }
  0x42   : > { %v313_v50 = vrot.slane %v312_v44, 1  ;;  %v348_v51 = vmax.f32 %v346_v39, %v347_v45  ;;  %v275_v54 = vrot.slane %v274_v48, 1  ;;  %v226_v58 = vrot.slane %v225_v52, 2  ;;  %vm365_vm5 = vmand %vm364_vm4, %vm359_vm1 }
  0x43   : > { %v254_v53 = vmax.f32 %v252_v41, %v253_v47  ;;  %v333_v55 = vmax.f32 %v331_v43, %v332_v49  ;;  %vm231_vm7 = vcmask 121856   ;;  %vm370_vm8 = vmand %vm369_vm6, %vm359_vm1  ;;  %vm293_vm9 = vcmask 7168  }
  0x44   : > { %v314_v56 = vmax.f32 %v312_v44, %v313_v50  ;;  %v349_v57 = vrot.slane %v348_v51, 1  ;;  %v276_v60 = vmax.f32 %v274_v48, %v275_v54  ;;  %v227_v3 = vmax.f32 %v225_v52, %v226_v58 }
  0x45   : > { %v255_v59 = vpack.i.bf16 %v254_v53, %v254_v53  ;;  %v334_v61 = vrot.slane %v333_v55, 1  ;;  %vm299_vm10 = vcmask 9216   ;;  %vm239_vm11 = vcmask 0  }
  0x46   : > { %v350_v62 = vmax.f32 %v348_v51, %v349_v57  ;;  %v277_v63 = vpack.i.bf16 %v276_v60, %v276_v60  ;;  %v315_v0 = vpack.i.bf16 %v314_v56, %v314_v56  ;;  %v228_v9 = vrot.slane %v227_v3, 1 }
  0x47   : > { %v335_v1 = vmax.f32 %v333_v55, %v334_v61  ;;  %vm382_vm13 = vcmask 18432  }
  0x48   : > { %v351_v2 = vpack.i.bf16 %v350_v62, %v350_v62  ;;  %v281_v4 = vsel %vm280_vm14, %v255_v59, %v277_v63  ;;  %v229_v12 = vmax.f32 %v227_v3, %v228_v9 }
  0x49   : > { %v336_v5 = vpack.i.bf16 %v335_v1, %v335_v1  ;;  %v284_v6 = vsel %vm282_vm15, %v281_v4, 4286644096  ;;  %v289_v11 = vsel %vm288_vm3, %v281_v4, 4286644096 }
  0x4a   : > { %286 = vmax.xlane.bf16.xlu1 %v284_v6  ;;  %v230_v14 = vpack.i.bf16 %v229_v12, %v229_v12 }
  0x4b   : > { %v352_v7 = vsel %vm280_vm14, %v315_v0, %v336_v5 }
  0x4c   : > { %v356_v8 = vsel %vm278_vm12, %v352_v7, %v351_v2  ;;  %v234_v15 = vsel %vm231_vm7, %v230_v14, 4286644096  ;;  %vm377_vm12 = vcmask 15360  }
  0x4d   : > { %v361_v10 = vsel %vm360_vm2, %v356_v8, 4286644096  ;;  %v366_v13 = vsel %vm365_vm5, %v356_v8, 4286644096  ;;  %v371_v16 = vsel %vm370_vm8, %v356_v8, 4286644096 }
  0x4e   : > { %362 = vmax.xlane.bf16.xlu0 %v361_v10 }
  0x52   : > { %291 = vmax.xlane.bf16.xlu1 %v289_v11 }
  0x56   : > { %367 = vmax.xlane.bf16.xlu0 %v366_v13 }
  0x5a   : > { %236 = vmax.xlane.bf16.xlu1 %v234_v15 }
  0x5e   : > { %372 = vmax.xlane.bf16.xlu0 %v371_v16 }
  0xdb   : > { %v287_v17 = vpop.xlane.xlu1 %286 }
  0xdf   : > { %v363_v21 = vpop.xlane.xlu0 %362 }
  0xe3   : > { %v292_v18 = vpop.xlane.xlu1 %291 }
  0xe4   : > { %v296_v19 = vsel %vm293_vm9, %v287_v17, %v292_v18 }
  0xe5   : > { %v298_v20 = vunpack.c.l.bf16 %v296_v19 }
  0xe7   : > { %300 = vst.msk [vmem:[%s203_s29] sm:$0x3] %vm299_vm10, %v298_v20  ;;  %v368_v22 = vpop.xlane.xlu0 %367 }
  0xe8   : > { %v376_v25 = vsel %vm293_vm9, %v363_v21, %v368_v22 }
  0xeb   : > { %v237_v23 = vpop.xlane.xlu1 %236 }
  0xec   : > { %v238_v24 = vunpack.c.l.bf16 %v237_v23 }
  0xee   : > { %240 = vst.msk [vmem:[%s199_s5] sm:$0x1] %vm239_vm11, %v238_v24 }
  0xef   : > { %v373_v26 = vpop.xlane.xlu0 %372 }
  0xf0   : > { %v379_v27 = vsel %vm377_vm12, %v376_v25, %v373_v26 }
  0xf1   : > { %v381_v28 = vunpack.c.l.bf16 %v379_v27 }
  0xf3   : > { %383 = vst.msk [vmem:[%s207_s9] sm:$0x7] %vm382_vm13, %v381_v28 }
  0xf4 PF: > { %p14_p8 = scmp.ge.s32.totalorder %s676_s17, 6   ;;  %s792_s12 = smov %s621_s13 }
  0xf5   : > { %s793_s13 = smov %s625_s14  ;;  %s794_s14 = smov %s686_s20 }
  0xf6   : > { %s795_s15 = smov %s676_s17  ;;  %16 = sbr.rel (!%p14_p8) target bundleno = 3 (0x3), region = 88 }
  0xfd   :  { %429 = vsyncpa [#allocation3], 1 }
  0xfe   :  { %431 = vsyncpa [#allocation3 + $0x1], 1 }

</bundles_post_ra>
